<compile_context>
chip_gen: v5e
topology: v5e:2x2
jax: 0.10.0
libtpu: 0.0.40
codegen_flags: <defaults>
</compile_context>

<pallas_src>
import functools
import math

import jax
import jax.numpy as jnp
from jax import lax
from jax.experimental import pallas as pl
from jax.experimental.pallas import tpu as pltpu


# ----------------------------- Pallas kernel --------------------------------
def _transformer_block_kernel(nhead, head_dim, eps, approx_recip,
                              x_ref, wqkv_ref, bqkv_ref, wo_ref, bo_ref,
                              g1_ref, be1_ref, w1_ref, bf1_ref,
                              w2_ref, bf2_ref, g2_ref, be2_ref,
                              o_ref):
    E = nhead * head_dim
    cdt = wqkv_ref.dtype                       # compute (matmul-input) dtype
    x = x_ref[0]                               # (L, E) float32
    L = x.shape[0]

    # ---- fused QKV in-projection (weights pre-transposed, Q-scale pre-folded).
    qkv = jnp.dot(x.astype(cdt), wqkv_ref[...],
                  preferred_element_type=jnp.float32) + bqkv_ref[0]     # (L, 3E) f32

    # ---- head-major split: one minor-2D transpose + leading-dim reshape/slices.
    qkv_t = qkv.T.reshape(3 * nhead, head_dim, L)      # (3*H, hd, L)
    q_t = qkv_t[:nhead]                                # (H, hd, L)  (already scaled)
    k_t = qkv_t[nhead:2 * nhead]                       # (H, hd, L)
    v_t = qkv_t[2 * nhead:]                            # (H, hd, L)
    q_h = jnp.swapaxes(q_t, 1, 2)                      # (H, L, hd)
    v_h = jnp.swapaxes(v_t, 1, 2)                      # (H, L, hd)

    # ---- scaled dot-product attention, all heads batched.
    s = jnp.einsum('hqd,hdk->hqk', q_h.astype(cdt), k_t.astype(cdt),
                   preferred_element_type=jnp.float32)                  # (H, L, L)
    s = s - jnp.max(s, axis=-1, keepdims=True)
    p = jnp.exp(s)
    denom = jnp.sum(p, axis=-1, keepdims=True)
    if approx_recip:
        p = p * pl.reciprocal(denom, approx=True)      # EUP slot, frees the VALU
    else:
        p = p / denom                                  # exact path (f32 mode)

    ctx = jnp.einsum('hqk,hkd->hqd', p.astype(cdt), v_h.astype(cdt),
                     preferred_element_type=jnp.float32)                # (H, L, hd)

    # ---- output projection accumulated per head (avoids the concat): sum_h ctx_h @ Wo_h.
    attn = jnp.einsum('hqd,hde->hqe', ctx.astype(cdt), wo_ref[...],
                      preferred_element_type=jnp.float32)               # (H, L, E)
    attn = jnp.sum(attn, axis=0) + bo_ref[0]                            # (L, E)

    # ---- residual + LayerNorm 1   (dropout = identity in eval mode).
    x1 = x + attn
    mu1 = jnp.mean(x1, axis=-1, keepdims=True)
    var1 = jnp.mean((x1 - mu1) ** 2, axis=-1, keepdims=True)
    x1n = (x1 - mu1) * lax.rsqrt(var1 + eps) * g1_ref[0] + be1_ref[0]

    # ---- FFN: Linear(E, 4E) -> exact (erf) GELU -> Linear(4E, E).
    h1 = (jnp.dot(x1n.astype(cdt), w1_ref[...],
                  preferred_element_type=jnp.float32) + bf1_ref[0])
    h1 = 0.5 * h1 * (1.0 + lax.erf(h1 * (1.0 / math.sqrt(2.0))))   # exact GELU (accuracy contract)
    ff = (jnp.dot(h1.astype(cdt), w2_ref[...],
                  preferred_element_type=jnp.float32) + bf2_ref[0])

    # ---- residual + LayerNorm 2.
    x2 = x1n + ff
    mu2 = jnp.mean(x2, axis=-1, keepdims=True)
    var2 = jnp.mean((x2 - mu2) ** 2, axis=-1, keepdims=True)
    o_ref[0] = (x2 - mu2) * lax.rsqrt(var2 + eps) * g2_ref[0] + be2_ref[0]


# ------------------------------- wrapper -------------------------------------
@functools.partial(jax.jit, static_argnames=("nhead", "eps", "compute_dtype"))
def transformer_block(x_lne, params, *, nhead, eps=1e-5, compute_dtype=jnp.bfloat16):
    """x_lne: (L, N, E) float32 — PyTorch nn.MultiheadAttention default layout."""
    L, N, E = x_lne.shape
    head_dim = E // nhead
    H = 4 * E
    cdt = compute_dtype

    x_nle = jnp.transpose(x_lne, (1, 0, 2))        # (N, L, E)

    # ---- one-time host-side parameter prep (constant-folded under jit) ----
    # Fold the 1/sqrt(head_dim) attention scale into the Q rows of the in-projection.
    scale = 1.0 / math.sqrt(head_dim)
    row_scale = jnp.concatenate([jnp.full((E,), scale, jnp.float32),
                                 jnp.ones((2 * E,), jnp.float32)])
    w_in = params["in_proj_w"] * row_scale[:, None]          # (3E, E)
    b_in = params["in_proj_b"] * row_scale                   # (3E,)

    wqkv_t = w_in.T.astype(cdt)                              # (E, 3E)  pre-transposed
    wo_h = params["out_proj_w"].T.reshape(nhead, head_dim, E).astype(cdt)  # (H, hd, E)
    w1_t = params["ffn_w1"].T.astype(cdt)                    # (E, 4E)
    w2_t = params["ffn_w2"].T.astype(cdt)                    # (4E, E)

    def row(v):                                              # biases / LN params as f32 rows
        return v.reshape(1, -1).astype(jnp.float32)

    args = (
        x_nle,
        wqkv_t, row(b_in),
        wo_h, row(params["out_proj_b"]),
        row(params["ln1_g"]), row(params["ln1_b"]),
        w1_t, row(params["ffn_b1"]),
        w2_t, row(params["ffn_b2"]),
        row(params["ln2_g"]), row(params["ln2_b"]),
    )

    # Grid-invariant full blocks for weights/biases (constant index_map => fetched
    # once).  For large E these would additionally be single-buffered and the FFN
    # weights streamed over a K grid axis to bound VMEM (not needed at toy shapes).
    def const2(shape):
        return pl.BlockSpec(shape, lambda b: (0, 0))

    def const3(shape):
        return pl.BlockSpec(shape, lambda b: (0, 0, 0))

    in_specs = [
        pl.BlockSpec((1, L, E), lambda b: (b, 0, 0)),        # x: one sequence / grid step
        const2((E, 3 * E)), const2((1, 3 * E)),              # in-proj
        const3((nhead, head_dim, E)), const2((1, E)),        # out-proj (per-head blocks)
        const2((1, E)), const2((1, E)),                      # norm1
        const2((E, H)), const2((1, H)),                      # ffn linear 1
        const2((H, E)), const2((1, E)),                      # ffn linear 2
        const2((1, E)), const2((1, E)),                      # norm2
    ]

    approx_recip = jnp.dtype(cdt) == jnp.dtype(jnp.bfloat16)

    out = pl.pallas_call(
        functools.partial(_transformer_block_kernel, nhead, head_dim, eps,
                          approx_recip),
        out_shape=jax.ShapeDtypeStruct((N, L, E), jnp.float32),
        grid_spec=pltpu.PrefetchScalarGridSpec(
            num_scalar_prefetch=0,
            grid=(N,),
            in_specs=in_specs,
            out_specs=pl.BlockSpec((1, L, E), lambda b: (b, 0, 0)),
        ),
        compiler_params=pltpu.CompilerParams(
            dimension_semantics=("parallel",),
            vmem_limit_bytes=32 * 1024 * 1024,
        ),
    )(*args)

    return jnp.transpose(out, (1, 0, 2))           # back to (L, N, E)


# -------------------------- pure-JAX reference --------------------------------
def transformer_block_ref(x_lne, params, nhead, eps=1e-5):
    L, N, E = x_lne.shape
    hd = E // nhead
    x = jnp.transpose(x_lne, (1, 0, 2))            # (N, L, E)

    qkv = jnp.einsum("nld,ed->nle", x, params["in_proj_w"]) + params["in_proj_b"]
    q, k, v = qkv[..., :E], qkv[..., E:2 * E], qkv[..., 2 * E:]

    def split(t):  # (N, L, E) -> (N, nhead, L, hd)
        return jnp.transpose(t.reshape(N, L, nhead, hd), (0, 2, 1, 3))

    q, k, v = split(q) / math.sqrt(hd), split(k), split(v)
    s = jnp.einsum("nhqd,nhkd->nhqk", q, k)
    p = jax.nn.softmax(s, axis=-1)
    ctx = jnp.einsum("nhqk,nhkd->nhqd", p, v)
    ctx = jnp.transpose(ctx, (0, 2, 1, 3)).reshape(N, L, E)
    attn = jnp.einsum("nle,de->nld", ctx, params["out_proj_w"]) + params["out_proj_b"]

    def ln(t, g, b):
        mu = t.mean(-1, keepdims=True)
        var = ((t - mu) ** 2).mean(-1, keepdims=True)
        return (t - mu) * lax.rsqrt(var + eps) * g + b

    x1 = ln(x + attn, params["ln1_g"], params["ln1_b"])
    h = jnp.einsum("nld,hd->nlh", x1, params["ffn_w1"]) + params["ffn_b1"]
    h = 0.5 * h * (1.0 + lax.erf(h * (1.0 / math.sqrt(2.0))))
    ff = jnp.einsum("nlh,dh->nld", h, params["ffn_w2"]) + params["ffn_b2"]
    x2 = ln(x1 + ff, params["ln2_g"], params["ln2_b"])
    return jnp.transpose(x2, (1, 0, 2))


# --------------------------------- main ---------------------------------------
if __name__ == "__main__":
    L, N, E, NHEAD = 8, 2, 32, 4
    H = 4 * E

    key = jax.random.PRNGKey(0)
    ks = jax.random.split(key, 12)

    params = {
        "in_proj_w":  0.05 * jax.random.normal(ks[0], (3 * E, E), jnp.float32),
        "in_proj_b":  0.01 * jax.random.normal(ks[1], (3 * E,), jnp.float32),
        "out_proj_w": 0.05 * jax.random.normal(ks[2], (E, E), jnp.float32),
        "out_proj_b": 0.01 * jax.random.normal(ks[3], (E,), jnp.float32),
        "ln1_g": 1.0 + 0.01 * jax.random.normal(ks[4], (E,), jnp.float32),
        "ln1_b": 0.01 * jax.random.normal(ks[5], (E,), jnp.float32),
        "ffn_w1": 0.05 * jax.random.normal(ks[6], (H, E), jnp.float32),
        "ffn_b1": 0.01 * jax.random.normal(ks[7], (H,), jnp.float32),
        "ffn_w2": 0.05 * jax.random.normal(ks[8], (E, H), jnp.float32),
        "ffn_b2": 0.01 * jax.random.normal(ks[9], (E,), jnp.float32),
        "ln2_g": 1.0 + 0.01 * jax.random.normal(ks[10], (E,), jnp.float32),
        "ln2_b": 0.01 * jax.random.normal(ks[11], (E,), jnp.float32),
    }

    x = jax.random.normal(jax.random.PRNGKey(42), (L, N, E), jnp.float32)

    ref = jax.block_until_ready(transformer_block_ref(x, params, NHEAD))

    # Exact-semantics path (f32 matmul inputs) — tight tolerance.
    out_f32 = jax.block_until_ready(
        transformer_block(x, params, nhead=NHEAD, compute_dtype=jnp.float32))
    assert out_f32.shape == (L, N, E)
    assert jnp.allclose(out_f32, ref, atol=1e-4, rtol=1e-4), (
        f"f32 max abs err {jnp.max(jnp.abs(out_f32 - ref))}")

    # MXU-optimized path (bf16 matmul inputs, f32 accumulation) — looser tolerance.
    out_bf16 = jax.block_until_ready(
        transformer_block(x, params, nhead=NHEAD, compute_dtype=jnp.bfloat16))
    assert out_bf16.shape == (L, N, E)
    assert jnp.allclose(out_bf16, ref, atol=3e-2, rtol=3e-2), (
        f"bf16 max abs err {jnp.max(jnp.abs(out_bf16 - ref))}")

    print("KERNEL_OK")
</pallas_src>

<mosaic_0001>
module attributes {stable_mosaic.version = 11 : i64} {
  func.func @_transformer_block_kernel(%arg0: i32, %arg1: memref<1x8x32xf32, #tpu.memory_space<vmem>>, %arg2: memref<32x96xf32, #tpu.memory_space<vmem>>, %arg3: memref<1x96xf32, #tpu.memory_space<vmem>>, %arg4: memref<4x8x32xf32, #tpu.memory_space<vmem>>, %arg5: memref<1x32xf32, #tpu.memory_space<vmem>>, %arg6: memref<1x32xf32, #tpu.memory_space<vmem>>, %arg7: memref<1x32xf32, #tpu.memory_space<vmem>>, %arg8: memref<32x128xf32, #tpu.memory_space<vmem>>, %arg9: memref<1x128xf32, #tpu.memory_space<vmem>>, %arg10: memref<128x32xf32, #tpu.memory_space<vmem>>, %arg11: memref<1x32xf32, #tpu.memory_space<vmem>>, %arg12: memref<1x32xf32, #tpu.memory_space<vmem>>, %arg13: memref<1x32xf32, #tpu.memory_space<vmem>>, %arg14: memref<1x8x32xf32, #tpu.memory_space<vmem>>) attributes {dimension_semantics = [#tpu.dimension_semantics<parallel>], iteration_bounds = array<i64: 2>, scalar_prefetch = 0 : i64, scratch_operands = 0 : i64, tpu.core_type = #tpu.core_type<tc>, window_params = [{transform_indices = @transform_0, window_bounds = array<i64: 1, 8, 32>}, {pipeline_mode = #tpu.pipeline_mode<synchronous>, transform_indices = @transform_1, window_bounds = array<i64: 32, 96>}, {pipeline_mode = #tpu.pipeline_mode<synchronous>, transform_indices = @transform_2, window_bounds = array<i64: 1, 96>}, {pipeline_mode = #tpu.pipeline_mode<synchronous>, transform_indices = @transform_3, window_bounds = array<i64: 4, 8, 32>}, {pipeline_mode = #tpu.pipeline_mode<synchronous>, transform_indices = @transform_4, window_bounds = array<i64: 1, 32>}, {pipeline_mode = #tpu.pipeline_mode<synchronous>, transform_indices = @transform_5, window_bounds = array<i64: 1, 32>}, {pipeline_mode = #tpu.pipeline_mode<synchronous>, transform_indices = @transform_6, window_bounds = array<i64: 1, 32>}, {pipeline_mode = #tpu.pipeline_mode<synchronous>, transform_indices = @transform_7, window_bounds = array<i64: 32, 128>}, {pipeline_mode = #tpu.pipeline_mode<synchronous>, transform_indices = @transform_8, window_bounds = array<i64: 1, 128>}, {pipeline_mode = #tpu.pipeline_mode<synchronous>, transform_indices = @transform_9, window_bounds = array<i64: 128, 32>}, {pipeline_mode = #tpu.pipeline_mode<synchronous>, transform_indices = @transform_10, window_bounds = array<i64: 1, 32>}, {pipeline_mode = #tpu.pipeline_mode<synchronous>, transform_indices = @transform_11, window_bounds = array<i64: 1, 32>}, {pipeline_mode = #tpu.pipeline_mode<synchronous>, transform_indices = @transform_12, window_bounds = array<i64: 1, 32>}, {transform_indices = @transform_13, window_bounds = array<i64: 1, 8, 32>}]} {
    %c0 = arith.constant 0 : index
    %c0_0 = arith.constant 0 : index
    %c0_1 = arith.constant 0 : index
    %0 = vector.load %arg1[%c0, %c0_0, %c0_1] : memref<1x8x32xf32, #tpu.memory_space<vmem>>, vector<1x8x32xf32>
    %1 = vector.shape_cast %0 : vector<1x8x32xf32> to vector<8x32xf32>
    %c0_2 = arith.constant 0 : index
    %c0_3 = arith.constant 0 : index
    %2 = vector.load %arg2[%c0_2, %c0_3] : memref<32x96xf32, #tpu.memory_space<vmem>>, vector<32x96xf32>
    %cst = arith.constant dense<0.000000e+00> : vector<8x96xf32>
    %3 = tpu.matmul %1, %2, %cst {dimension_numbers = #tpu.dot_dimension_numbers<[1], [0], [0], [1], [0, 0, 1, 1], [], []>} : vector<8x32xf32>, vector<32x96xf32>, vector<8x96xf32> -> vector<8x96xf32>
    %c0_4 = arith.constant 0 : index
    %c0_5 = arith.constant 0 : index
    %4 = vector.load %arg3[%c0_4, %c0_5] : memref<1x96xf32, #tpu.memory_space<vmem>>, vector<1x96xf32>
    %5 = vector.shape_cast %4 : vector<1x96xf32> to vector<96xf32>
    %6 = vector.shape_cast %5 : vector<96xf32> to vector<1x96xf32>
    %7 = vector.broadcast %6 : vector<1x96xf32> to vector<8x96xf32>
    %8 = arith.addf %3, %7 : vector<8x96xf32>
    %9 = tpu.transpose %8, [1, 0] : vector<8x96xf32> -> vector<96x8xf32>
    %10 = vector.shape_cast %9 : vector<96x8xf32> to vector<12x8x8xf32>
    %11 = vector.extract_strided_slice %10 {offsets = [0, 0, 0], sizes = [4, 8, 8], strides = [1, 1, 1]} : vector<12x8x8xf32> to vector<4x8x8xf32>
    %12 = vector.extract_strided_slice %10 {offsets = [4, 0, 0], sizes = [4, 8, 8], strides = [1, 1, 1]} : vector<12x8x8xf32> to vector<4x8x8xf32>
    %13 = vector.extract_strided_slice %10 {offsets = [8, 0, 0], sizes = [4, 8, 8], strides = [1, 1, 1]} : vector<12x8x8xf32> to vector<4x8x8xf32>
    %14 = tpu.transpose %11, [0, 2, 1] : vector<4x8x8xf32> -> vector<4x8x8xf32>
    %15 = tpu.transpose %13, [0, 2, 1] : vector<4x8x8xf32> -> vector<4x8x8xf32>
    "tpu.trace_start"() <{level = 10 : i32, message = "hqd,hdk->hqk"}> : () -> ()
    %cst_6 = arith.constant dense<0.000000e+00> : vector<4x8x8xf32>
    %16 = tpu.matmul %14, %12, %cst_6 {dimension_numbers = #tpu.dot_dimension_numbers<[2], [1], [1], [2], [0, 0, 0, 1, 1, 2], [0], [0]>} : vector<4x8x8xf32>, vector<4x8x8xf32>, vector<4x8x8xf32> -> vector<4x8x8xf32>
    "tpu.trace_stop"() : () -> ()
    %cst_7 = arith.constant dense<0xFF800000> : vector<4x8xf32>
    %17 = vector.multi_reduction <maximumf>, %16, %cst_7 [2] : vector<4x8x8xf32> to vector<4x8xf32>
    %18 = vector.shape_cast %17 : vector<4x8xf32> to vector<4x8x1xf32>
    %19 = vector.broadcast %18 : vector<4x8x1xf32> to vector<4x8x8xf32>
    %20 = arith.subf %16, %19 : vector<4x8x8xf32>
    %21 = math.exp %20 : vector<4x8x8xf32>
    %cst_8 = arith.constant dense<0.000000e+00> : vector<4x8xf32>
    %22 = vector.multi_reduction <add>, %21, %cst_8 [2] : vector<4x8x8xf32> to vector<4x8xf32>
    %23 = vector.shape_cast %22 : vector<4x8xf32> to vector<4x8x1xf32>
    %24 = vector.broadcast %23 : vector<4x8x1xf32> to vector<4x8x8xf32>
    %25 = arith.divf %21, %24 : vector<4x8x8xf32>
    "tpu.trace_start"() <{level = 10 : i32, message = "hqk,hkd->hqd"}> : () -> ()
    %cst_9 = arith.constant dense<0.000000e+00> : vector<4x8x8xf32>
    %26 = tpu.matmul %25, %15, %cst_9 {dimension_numbers = #tpu.dot_dimension_numbers<[2], [1], [1], [2], [0, 0, 0, 1, 1, 2], [0], [0]>} : vector<4x8x8xf32>, vector<4x8x8xf32>, vector<4x8x8xf32> -> vector<4x8x8xf32>
    "tpu.trace_stop"() : () -> ()
    %c0_10 = arith.constant 0 : index
    %c0_11 = arith.constant 0 : index
    %c0_12 = arith.constant 0 : index
    %27 = vector.load %arg4[%c0_10, %c0_11, %c0_12] : memref<4x8x32xf32, #tpu.memory_space<vmem>>, vector<4x8x32xf32>
    "tpu.trace_start"() <{level = 10 : i32, message = "hqd,hde->hqe"}> : () -> ()
    %cst_13 = arith.constant dense<0.000000e+00> : vector<4x8x32xf32>
    %28 = tpu.matmul %26, %27, %cst_13 {dimension_numbers = #tpu.dot_dimension_numbers<[2], [1], [1], [2], [0, 0, 0, 1, 1, 2], [0], [0]>} : vector<4x8x8xf32>, vector<4x8x32xf32>, vector<4x8x32xf32> -> vector<4x8x32xf32>
    "tpu.trace_stop"() : () -> ()
    %cst_14 = arith.constant dense<0.000000e+00> : vector<8x32xf32>
    %29 = vector.multi_reduction <add>, %28, %cst_14 [0] : vector<4x8x32xf32> to vector<8x32xf32>
    %c0_15 = arith.constant 0 : index
    %c0_16 = arith.constant 0 : index
    %30 = vector.load %arg5[%c0_15, %c0_16] : memref<1x32xf32, #tpu.memory_space<vmem>>, vector<1x32xf32>
    %31 = vector.shape_cast %30 : vector<1x32xf32> to vector<32xf32>
    %32 = vector.shape_cast %31 : vector<32xf32> to vector<1x32xf32>
    %33 = vector.broadcast %32 : vector<1x32xf32> to vector<8x32xf32>
    %34 = arith.addf %29, %33 : vector<8x32xf32>
    %35 = arith.addf %1, %34 : vector<8x32xf32>
    %cst_17 = arith.constant dense<0.000000e+00> : vector<8xf32>
    %36 = vector.multi_reduction <add>, %35, %cst_17 [1] : vector<8x32xf32> to vector<8xf32>
    %37 = vector.shape_cast %36 : vector<8xf32> to vector<8x1xf32>
    %cst_18 = arith.constant 3.200000e+01 : f32
    %38 = vector.broadcast %cst_18 : f32 to vector<8x1xf32>
    %39 = arith.divf %37, %38 : vector<8x1xf32>
    %40 = vector.broadcast %39 : vector<8x1xf32> to vector<8x32xf32>
    %41 = arith.subf %35, %40 : vector<8x32xf32>
    %42 = arith.mulf %41, %41 : vector<8x32xf32>
    %cst_19 = arith.constant dense<0.000000e+00> : vector<8xf32>
    %43 = vector.multi_reduction <add>, %42, %cst_19 [1] : vector<8x32xf32> to vector<8xf32>
    %44 = vector.shape_cast %43 : vector<8xf32> to vector<8x1xf32>
    %cst_20 = arith.constant 3.200000e+01 : f32
    %45 = vector.broadcast %cst_20 : f32 to vector<8x1xf32>
    %46 = arith.divf %44, %45 : vector<8x1xf32>
    %47 = vector.broadcast %39 : vector<8x1xf32> to vector<8x32xf32>
    %48 = arith.subf %35, %47 : vector<8x32xf32>
    %cst_21 = arith.constant 9.99999974E-6 : f32
    %49 = vector.broadcast %cst_21 : f32 to vector<8x1xf32>
    %50 = arith.addf %46, %49 : vector<8x1xf32>
    %51 = math.rsqrt %50 : vector<8x1xf32>
    %52 = vector.broadcast %51 : vector<8x1xf32> to vector<8x32xf32>
    %53 = arith.mulf %48, %52 : vector<8x32xf32>
    %c0_22 = arith.constant 0 : index
    %c0_23 = arith.constant 0 : index
    %54 = vector.load %arg6[%c0_22, %c0_23] : memref<1x32xf32, #tpu.memory_space<vmem>>, vector<1x32xf32>
    %55 = vector.shape_cast %54 : vector<1x32xf32> to vector<32xf32>
    %56 = vector.shape_cast %55 : vector<32xf32> to vector<1x32xf32>
    %57 = vector.broadcast %56 : vector<1x32xf32> to vector<8x32xf32>
    %58 = arith.mulf %53, %57 : vector<8x32xf32>
    %c0_24 = arith.constant 0 : index
    %c0_25 = arith.constant 0 : index
    %59 = vector.load %arg7[%c0_24, %c0_25] : memref<1x32xf32, #tpu.memory_space<vmem>>, vector<1x32xf32>
    %60 = vector.shape_cast %59 : vector<1x32xf32> to vector<32xf32>
    %61 = vector.shape_cast %60 : vector<32xf32> to vector<1x32xf32>
    %62 = vector.broadcast %61 : vector<1x32xf32> to vector<8x32xf32>
    %63 = arith.addf %58, %62 : vector<8x32xf32>
    %c0_26 = arith.constant 0 : index
    %c0_27 = arith.constant 0 : index
    %64 = vector.load %arg8[%c0_26, %c0_27] : memref<32x128xf32, #tpu.memory_space<vmem>>, vector<32x128xf32>
    %cst_28 = arith.constant dense<0.000000e+00> : vector<8x128xf32>
    %65 = tpu.matmul %63, %64, %cst_28 {dimension_numbers = #tpu.dot_dimension_numbers<[1], [0], [0], [1], [0, 0, 1, 1], [], []>} : vector<8x32xf32>, vector<32x128xf32>, vector<8x128xf32> -> vector<8x128xf32>
    %c0_29 = arith.constant 0 : index
    %c0_30 = arith.constant 0 : index
    %66 = vector.load %arg9[%c0_29, %c0_30] : memref<1x128xf32, #tpu.memory_space<vmem>>, vector<1x128xf32>
    %67 = vector.shape_cast %66 : vector<1x128xf32> to vector<128xf32>
    %68 = vector.shape_cast %67 : vector<128xf32> to vector<1x128xf32>
    %69 = vector.broadcast %68 : vector<1x128xf32> to vector<8x128xf32>
    %70 = arith.addf %65, %69 : vector<8x128xf32>
    %cst_31 = arith.constant 5.000000e-01 : f32
    %71 = vector.broadcast %cst_31 : f32 to vector<8x128xf32>
    %72 = arith.mulf %71, %70 : vector<8x128xf32>
    %cst_32 = arith.constant 0.707106769 : f32
    %73 = vector.broadcast %cst_32 : f32 to vector<8x128xf32>
    %74 = arith.mulf %70, %73 : vector<8x128xf32>
    %75 = math.erf %74 : vector<8x128xf32>
    %cst_33 = arith.constant 1.000000e+00 : f32
    %76 = vector.broadcast %cst_33 : f32 to vector<8x128xf32>
    %77 = arith.addf %76, %75 : vector<8x128xf32>
    %78 = arith.mulf %72, %77 : vector<8x128xf32>
    %c0_34 = arith.constant 0 : index
    %c0_35 = arith.constant 0 : index
    %79 = vector.load %arg10[%c0_34, %c0_35] : memref<128x32xf32, #tpu.memory_space<vmem>>, vector<128x32xf32>
    %cst_36 = arith.constant dense<0.000000e+00> : vector<8x32xf32>
    %80 = tpu.matmul %78, %79, %cst_36 {dimension_numbers = #tpu.dot_dimension_numbers<[1], [0], [0], [1], [0, 0, 1, 1], [], []>} : vector<8x128xf32>, vector<128x32xf32>, vector<8x32xf32> -> vector<8x32xf32>
    %c0_37 = arith.constant 0 : index
    %c0_38 = arith.constant 0 : index
    %81 = vector.load %arg11[%c0_37, %c0_38] : memref<1x32xf32, #tpu.memory_space<vmem>>, vector<1x32xf32>
    %82 = vector.shape_cast %81 : vector<1x32xf32> to vector<32xf32>
    %83 = vector.shape_cast %82 : vector<32xf32> to vector<1x32xf32>
    %84 = vector.broadcast %83 : vector<1x32xf32> to vector<8x32xf32>
    %85 = arith.addf %80, %84 : vector<8x32xf32>
    %86 = arith.addf %63, %85 : vector<8x32xf32>
    %cst_39 = arith.constant dense<0.000000e+00> : vector<8xf32>
    %87 = vector.multi_reduction <add>, %86, %cst_39 [1] : vector<8x32xf32> to vector<8xf32>
    %88 = vector.shape_cast %87 : vector<8xf32> to vector<8x1xf32>
    %cst_40 = arith.constant 3.200000e+01 : f32
    %89 = vector.broadcast %cst_40 : f32 to vector<8x1xf32>
    %90 = arith.divf %88, %89 : vector<8x1xf32>
    %91 = vector.broadcast %90 : vector<8x1xf32> to vector<8x32xf32>
    %92 = arith.subf %86, %91 : vector<8x32xf32>
    %93 = arith.mulf %92, %92 : vector<8x32xf32>
    %cst_41 = arith.constant dense<0.000000e+00> : vector<8xf32>
    %94 = vector.multi_reduction <add>, %93, %cst_41 [1] : vector<8x32xf32> to vector<8xf32>
    %95 = vector.shape_cast %94 : vector<8xf32> to vector<8x1xf32>
    %cst_42 = arith.constant 3.200000e+01 : f32
    %96 = vector.broadcast %cst_42 : f32 to vector<8x1xf32>
    %97 = arith.divf %95, %96 : vector<8x1xf32>
    %98 = vector.broadcast %90 : vector<8x1xf32> to vector<8x32xf32>
    %99 = arith.subf %86, %98 : vector<8x32xf32>
    %cst_43 = arith.constant 9.99999974E-6 : f32
    %100 = vector.broadcast %cst_43 : f32 to vector<8x1xf32>
    %101 = arith.addf %97, %100 : vector<8x1xf32>
    %102 = math.rsqrt %101 : vector<8x1xf32>
    %103 = vector.broadcast %102 : vector<8x1xf32> to vector<8x32xf32>
    %104 = arith.mulf %99, %103 : vector<8x32xf32>
    %c0_44 = arith.constant 0 : index
    %c0_45 = arith.constant 0 : index
    %105 = vector.load %arg12[%c0_44, %c0_45] : memref<1x32xf32, #tpu.memory_space<vmem>>, vector<1x32xf32>
    %106 = vector.shape_cast %105 : vector<1x32xf32> to vector<32xf32>
    %107 = vector.shape_cast %106 : vector<32xf32> to vector<1x32xf32>
    %108 = vector.broadcast %107 : vector<1x32xf32> to vector<8x32xf32>
    %109 = arith.mulf %104, %108 : vector<8x32xf32>
    %c0_46 = arith.constant 0 : index
    %c0_47 = arith.constant 0 : index
    %110 = vector.load %arg13[%c0_46, %c0_47] : memref<1x32xf32, #tpu.memory_space<vmem>>, vector<1x32xf32>
    %111 = vector.shape_cast %110 : vector<1x32xf32> to vector<32xf32>
    %112 = vector.shape_cast %111 : vector<32xf32> to vector<1x32xf32>
    %113 = vector.broadcast %112 : vector<1x32xf32> to vector<8x32xf32>
    %114 = arith.addf %109, %113 : vector<8x32xf32>
    %c0_48 = arith.constant 0 : index
    %c0_49 = arith.constant 0 : index
    %c0_50 = arith.constant 0 : index
    %115 = vector.load %arg14[%c0_48, %c0_49, %c0_50] : memref<1x8x32xf32, #tpu.memory_space<vmem>>, vector<1x8x32xf32>
    %116 = vector.shape_cast %115 : vector<1x8x32xf32> to vector<8x32xf32>
    %117 = vector.shape_cast %114 : vector<8x32xf32> to vector<1x8x32xf32>
    tpu.vector_store %arg14[%c0_48, %c0_49, %c0_50], %117 {strides = array<i32>} : memref<1x8x32xf32, #tpu.memory_space<vmem>>, vector<1x8x32xf32>,
    return
  }
  func.func @transform_0(%arg0: i32) -> (i32, i32, i32) {
    %c0_i32 = arith.constant 0 : i32
    %c0_i32_0 = arith.constant 0 : i32
    %c0_i32_1 = arith.constant 0 : i32
    return %arg0, %c0_i32, %c0_i32_0 : i32, i32, i32
  }
  func.func @transform_1(%arg0: i32) -> (i32, i32) {
    %c0_i32 = arith.constant 0 : i32
    %c0_i32_0 = arith.constant 0 : i32
    %c0_i32_1 = arith.constant 0 : i32
    return %c0_i32, %c0_i32_0 : i32, i32
  }
  func.func @transform_2(%arg0: i32) -> (i32, i32) {
    %c0_i32 = arith.constant 0 : i32
    %c0_i32_0 = arith.constant 0 : i32
    %c0_i32_1 = arith.constant 0 : i32
    return %c0_i32, %c0_i32_0 : i32, i32
  }
  func.func @transform_3(%arg0: i32) -> (i32, i32, i32) {
    %c0_i32 = arith.constant 0 : i32
    %c0_i32_0 = arith.constant 0 : i32
    %c0_i32_1 = arith.constant 0 : i32
    %c0_i32_2 = arith.constant 0 : i32
    return %c0_i32, %c0_i32_0, %c0_i32_1 : i32, i32, i32
  }
  func.func @transform_4(%arg0: i32) -> (i32, i32) {
    %c0_i32 = arith.constant 0 : i32
    %c0_i32_0 = arith.constant 0 : i32
    %c0_i32_1 = arith.constant 0 : i32
    return %c0_i32, %c0_i32_0 : i32, i32
  }
  func.func @transform_5(%arg0: i32) -> (i32, i32) {
    %c0_i32 = arith.constant 0 : i32
    %c0_i32_0 = arith.constant 0 : i32
    %c0_i32_1 = arith.constant 0 : i32
    return %c0_i32, %c0_i32_0 : i32, i32
  }
  func.func @transform_6(%arg0: i32) -> (i32, i32) {
    %c0_i32 = arith.constant 0 : i32
    %c0_i32_0 = arith.constant 0 : i32
    %c0_i32_1 = arith.constant 0 : i32
    return %c0_i32, %c0_i32_0 : i32, i32
  }
  func.func @transform_7(%arg0: i32) -> (i32, i32) {
    %c0_i32 = arith.constant 0 : i32
    %c0_i32_0 = arith.constant 0 : i32
    %c0_i32_1 = arith.constant 0 : i32
    return %c0_i32, %c0_i32_0 : i32, i32
  }
  func.func @transform_8(%arg0: i32) -> (i32, i32) {
    %c0_i32 = arith.constant 0 : i32
    %c0_i32_0 = arith.constant 0 : i32
    %c0_i32_1 = arith.constant 0 : i32
    return %c0_i32, %c0_i32_0 : i32, i32
  }
  func.func @transform_9(%arg0: i32) -> (i32, i32) {
    %c0_i32 = arith.constant 0 : i32
    %c0_i32_0 = arith.constant 0 : i32
    %c0_i32_1 = arith.constant 0 : i32
    return %c0_i32, %c0_i32_0 : i32, i32
  }
  func.func @transform_10(%arg0: i32) -> (i32, i32) {
    %c0_i32 = arith.constant 0 : i32
    %c0_i32_0 = arith.constant 0 : i32
    %c0_i32_1 = arith.constant 0 : i32
    return %c0_i32, %c0_i32_0 : i32, i32
  }
  func.func @transform_11(%arg0: i32) -> (i32, i32) {
    %c0_i32 = arith.constant 0 : i32
    %c0_i32_0 = arith.constant 0 : i32
    %c0_i32_1 = arith.constant 0 : i32
    return %c0_i32, %c0_i32_0 : i32, i32
  }
  func.func @transform_12(%arg0: i32) -> (i32, i32) {
    %c0_i32 = arith.constant 0 : i32
    %c0_i32_0 = arith.constant 0 : i32
    %c0_i32_1 = arith.constant 0 : i32
    return %c0_i32, %c0_i32_0 : i32, i32
  }
  func.func @transform_13(%arg0: i32) -> (i32, i32, i32) {
    %c0_i32 = arith.constant 0 : i32
    %c0_i32_0 = arith.constant 0 : i32
    %c0_i32_1 = arith.constant 0 : i32
    return %arg0, %c0_i32, %c0_i32_0 : i32, i32, i32
  }
}

</mosaic_0001>

<bundles_post_ra>
// kernel: transformer_block.1
= control target key start
LH: loop header
LB: loop body
LE: loop exit
PB: predicated region body
PF: predicated region fallthrough
CT: control target
= control target key end

     0   :  { %s1421_s25 = smov 0   ;;  %s1614_s0 = inlined_call_operand.vmem [shape: f32[2,8,32], index: 0, kind: input, shape index: {}]   ;;  %s1615_s1 = inlined_call_operand.vmem [shape: f32[32,96], index: 1, kind: input, shape index: {}]   ;;  %s1616_s2 = inlined_call_operand.vmem [shape: f32[1,96], index: 2, kind: input, shape index: {}]   ;;  %s1617_s3 = inlined_call_operand.vmem [shape: f32[4,8,32], index: 3, kind: input, shape index: {}]   ;;  %s1618_s4 = inlined_call_operand.vmem [shape: f32[1,32], index: 4, kind: input, shape index: {}]   ;;  %s1619_s5 = inlined_call_operand.vmem [shape: f32[1,32], index: 5, kind: input, shape index: {}]   ;;  %s1620_s6 = inlined_call_operand.vmem [shape: f32[1,32], index: 6, kind: input, shape index: {}]   ;;  %s1621_s7 = inlined_call_operand.vmem [shape: f32[32,128], index: 7, kind: input, shape index: {}]   ;;  %s1622_s8 = inlined_call_operand.vmem [shape: f32[1,128], index: 8, kind: input, shape index: {}]   ;;  %s1623_s9 = inlined_call_operand.vmem [shape: f32[128,32], index: 9, kind: input, shape index: {}]   ;;  %s1624_s10 = inlined_call_operand.vmem [shape: f32[1,32], index: 10, kind: input, shape index: {}]   ;;  %s1625_s11 = inlined_call_operand.vmem [shape: f32[1,32], index: 11, kind: input, shape index: {}]   ;;  %s1626_s12 = inlined_call_operand.vmem [shape: f32[1,32], index: 12, kind: input, shape index: {}]   ;;  %s1627_s13 = inlined_call_operand.vmem [shape: f32[2,8,32], index: 13, kind: output, shape index: {}]  }
   0x1 LB: > { %s1272_s26 = sadd.s32 4294967295, %s1348_s25   ;;  %p1276_p0 = scmp.ge.s32.totalorder %s1348_s25, 1  ;;  %s1348_s25 = sphi %s1421_s25, %s23_s25  }
   0x2   : > { %p386_p1 = scmp.lt.s32.totalorder %s1348_s25, 3 }
   0x4   : > { %p387_p2 = pnand %p1276_p0, %p386_p1 }
   0x5   : > { %p428_p3 = scmp.lt.s32.totalorder (!%p387_p2), %s1272_s26, 1 }
   0x6   : > { %390 = sbr.rel (%p387_p2) target bundleno = 2008 (0x7d8), region = 72 }
   0xb   : > { %v440_v0 = vld [vmem:[%s1615_s1 + $0x18] sm:$0xff]  ;;  %v439_v1 = vld [vmem:[%s1615_s1 + $0x10] sm:$0xff]  ;;  %v438_v2 = vld [vmem:[%s1615_s1 + $0x8] sm:$0xff]  ;;  %s1629_s26 = smov (!%p428_p3, %s1272_s26), 1  ;;  %vm445_vm0 = vcmask 261120   ;;  %vm629_vm1 = vcmask 64512  }
   0xc   : > { %461 = vmatpush.msra.mxu0 %v440_v0  ;;  %v437_v3 = vld [vmem:[%s1615_s1] sm:$0xff]  ;;  %s1277_s18 = sshll.u32 %s1629_s26, 3 }
   0xd   : > { %s431_s21 = scalar_lea.vmem %s1614_s0, %s1277_s18  ;;  %v1310_v5 = vld [vmem:[%s1616_s2] ss:$0 sm:$0xff]  ;;  %s435_s17 = scalar_lea.vmem %s1627_s13, %s1277_s18 }
   0xe   : > { %462 = vmatpush.msra.mxu0 %v439_v1  ;;  %v1449_v4 = vld [vmem:[%s431_s21] sm:$0xff] }
  0x10   : > { %463 = vmatpush.msra.mxu0 %v438_v2 }
  0x12   : > { %464 = vmatpush.msra.mxu0 %v437_v3 }
  0x13   : > { %1279 = vmatmul.msk.f32.vlgmr.msra.gmra.mxu0 %vm445_vm0, %v1449_v4 }
  0x90   : > { %v466_v6 = vpop.f32.mrf.mxu0 }
  0x91   : > { %v467_v7 = vadd.f32 %v1310_v5, %v466_v6 }
  0x93   : > { %469 = vxpose.xlu0.b32.start.end [1/1] (short) (narrow) %v467_v7, 96 }
 0x137   : > { %v485_v8 = vpop.trf.xlu0 }
 0x138   : > { %501 = vxpose.xlu0.b32.start.end [1/1] (short) (narrow) %v485_v8, 8 }
 0x13f   : > { %v486_v9 = vpop.trf.xlu0 }
 0x140   : > { %533 = vxpose.xlu1.b32.start.end [1/1] (short) (narrow) %v486_v9, 8 }
 0x147   : > { %v487_v10 = vpop.trf.xlu0 }
 0x148   : > { %565 = vxpose.xlu1.b32.start.end [1/1] (short) (narrow) %v487_v10, 8 }
 0x14f   : > { %v488_v11 = vpop.trf.xlu0 }
 0x150   : > { %597 = vxpose.xlu2.b32.start.end [1/1] (short) (narrow) %v488_v11, 8 }
 0x157   : > { %v489_v12 = vpop.trf.xlu0 }
 0x158   : > { %648 = vmatpush.msra.mxu1 %v489_v12 }
 0x15f   : > { %v490_v13 = vpop.trf.xlu0 }
 0x160   : > { %671 = vmatpush.msra.mxu2 %v490_v13 }
 0x167   : > { %v491_v14 = vpop.trf.xlu0 }
 0x168   : > { %694 = vmatpush.msrb.mxu1 %v491_v14 }
 0x16f   : > { %v492_v15 = vpop.trf.xlu0 }
 0x177   : > { %v493_v16 = vpop.trf.xlu0 }
 0x178   : > { %1284 = vmatpush.xpose.msk.msrb.mxu2 %vm629_vm1, %v493_v16 }
 0x17f   : > { %v494_v17 = vpop.trf.xlu0 }
 0x180   : > { %1286 = vmatpush.xpose.msk.msrb.mxu0 %vm629_vm1, %v494_v17 }
 0x187   : > { %v495_v18 = vpop.trf.xlu0 }
 0x188   : > { %1288 = vmatpush.xpose.msk.msra.mxu0 %vm629_vm1, %v495_v18 }
 0x18f   : > { %v496_v19 = vpop.trf.xlu0 }
 0x1dc   : > { %v517_v20 = vpop.trf.xlu0 }
 0x1dd   : > { %1280 = vmatmul.msk.f32.vlgmr.msra.gmra.mxu1 %vm629_vm1, %v517_v20 }
 0x1de   : > { %717 = vmatpush.msra.mxu1 %v492_v15 }
 0x1e4   : > { %v549_v21 = vpop.trf.xlu1 }
 0x1e5   : > { %1281 = vmatmul.msk.f32.vlgmr.msra.gmra.mxu2 %vm629_vm1, %v549_v21 }
 0x1e9   : > { %v613_v23 = vpop.trf.xlu2 }
 0x1ec   : > { %v581_v22 = vpop.trf.xlu1 }
 0x1ed   : > { %1282 = vmatmul.msk.f32.vlgmr.msrb.gmra.mxu1 %vm629_vm1, %v581_v22 }
 0x1ee   : > { %1290 = vmatpush.xpose.msk.msrb.mxu1 %vm629_vm1, %v496_v19 }
 0x1f5   : > { %1283 = vmatmul.msk.f32.vlgmr.msra.gmra.mxu1 %vm629_vm1, %v613_v23 }
 0x25a   : > { %v650_v24 = vpop.f32.mrf.mxu1 }
 0x25b   : > { %v722_v25 = vsel %vm629_vm1, %v650_v24, -inf }
 0x25c   : > { %723 = vmax.xlane.f32.xlu2 %v722_v25 }
 0x268   : > { %v673_v26 = vpop.f32.mrf.mxu2 }
 0x269   : > { %v725_v27 = vsel %vm629_vm1, %v673_v26, -inf }
 0x26a   : > { %726 = vmax.xlane.f32.xlu1 %v725_v27  ;;  %v696_v28 = vpop.f32.mrf.mxu1 }
 0x26b   : > { %v728_v29 = vsel %vm629_vm1, %v696_v28, -inf }
 0x26c   : > { %729 = vmax.xlane.f32.xlu0 %v728_v29 }
 0x272   : > { %v719_v30 = vpop.f32.mrf.mxu1 }
 0x273   : > { %v731_v31 = vsel %vm629_vm1, %v719_v30, -inf }
 0x274   : > { %732 = vmax.xlane.f32.xlu1 %v731_v31 }
 0x2cf   : > { %v724_v32 = vpop.xlane.xlu2 %723 }
 0x2d0   : > { %v734_v33 = vsub.f32 %v650_v24, %v724_v32 }
 0x2d2   : > { %v738_v34 = vmul.f32 1.442695, %v734_v33 }
 0x2d4   : > { %1318 = vpow2.f32 %v738_v34 }
 0x2da   : > { %v1319_v35 = vpop.eup %1318 }
 0x2db   : > { %v746_v36 = vsel %vm629_vm1, %v1319_v35, 0.0 }
 0x2dc   : > { %747 = vadd.xlane.f32.xlu1 %v746_v36 }
 0x2dd   : > { %v727_v37 = vpop.xlane.xlu1 %726 }
 0x2de   : > { %v735_v38 = vsub.f32 %v673_v26, %v727_v37  ;;  %v922_v37 = vld [vmem:[%s1617_s3] sm:$0xff] }
 0x2df   : > { %v730_v39 = vpop.xlane.xlu0 %729  ;;  %944 = vmatpush.msra.mxu2 %v922_v37  ;;  %v1154_v37 = vld [vmem:[%s1623_s9 + $0x48] sm:$0xff] }
 0x2e0   : > { %v740_v40 = vmul.f32 1.442695, %v735_v38  ;;  %v736_v41 = vsub.f32 %v696_v28, %v730_v39  ;;  %v923_v38 = vld [vmem:[%s1617_s3 + $0x8] sm:$0xff]  ;;  %v924_v39 = vld [vmem:[%s1617_s3 + $0x10] sm:$0xff] }
 0x2e1   : > { %967 = vmatpush.msra.mxu3 %v923_v38 }
 0x2e2   : > { %1320 = vpow2.f32 %v740_v40  ;;  %v742_v42 = vmul.f32 1.442695, %v736_v41  ;;  %v925_v40 = vld [vmem:[%s1617_s3 + $0x18] sm:$0xff] }
 0x2e3   : > { %1013 = vmatpush.msra.mxu1 %v925_v40 }
 0x2e4   : > { %1322 = vpow2.f32 %v742_v42 }
 0x2e7   : > { %v733_v43 = vpop.xlane.xlu1 %732 }
 0x2e8   : > { %v1321_v44 = vpop.eup %1320  ;;  %v737_v45 = vsub.f32 %v719_v30, %v733_v43 }
 0x2e9   : > { %v749_v46 = vsel %vm629_vm1, %v1321_v44, 0.0 }
 0x2ea   : > { %v1470_v47 = vpop.eup %1322  ;;  %v744_v48 = vmul.f32 1.442695, %v737_v45  ;;  %750 = vadd.xlane.f32.xlu2 %v749_v46 }
 0x2eb   : > { %v752_v49 = vsel %vm629_vm1, %v1470_v47, 0.0 }
 0x2ec   : > { %1324 = vpow2.f32 %v744_v48  ;;  %753 = vadd.xlane.f32.xlu1 %v752_v49 }
 0x2f2   : > { %v1474_v50 = vpop.eup %1324 }
 0x2f3   : > { %v755_v51 = vsel %vm629_vm1, %v1474_v50, 0.0 }
 0x2f4   : > { %756 = vadd.xlane.f32.xlu2 %v755_v51 }
 0x34f   : > { %v748_v52 = vpop.xlane.xlu1 %747 }
 0x350   : > { %1326 = vrcp.f32 %v748_v52  ;;  %v769_v57 = vand.u32 2147483648, %v748_v52  ;;  %v767_v58 = vand.u32 2147483647, %v748_v52  ;;  %vm763_vm3 = vweird.f32 %v748_v52 }
 0x352   : > { %v770_v61 = vor.u32 1.1754944e-38, %v769_v57  ;;  %vm768_vm5 = vcmp.eq.f32.partialorder %v767_v58, 8.507059e+37 }
 0x356   : > { %v1327_v53 = vpop.eup %1326 }
 0x357   : > { %v759_v54 = vmul.f32 %v1327_v53, %v748_v52  ;;  %vm764_vm2 = vweird.f32 %v1327_v53 }
 0x358   : > { %vm765_vm4 = vmor %vm763_vm3, %vm764_vm2 }
 0x359   : > { %v760_v55 = vsub.f32 1.0, %v759_v54  ;;  %v1311_v54 = vld [vmem:[%s1618_s4] ss:$0 sm:$0xff] }
 0x35b   : > { %v761_v56 = vmul.f32 %v1327_v53, %v760_v55 }
 0x35d   : > { %v762_v59 = vadd.f32 %v1327_v53, %v761_v56  ;;  %v751_v60 = vpop.xlane.xlu2 %750 }
 0x35e   : > { %1328 = vrcp.f32 %v751_v60  ;;  %v784_v9 = vand.u32 2147483648, %v751_v60  ;;  %v782_v11 = vand.u32 2147483647, %v751_v60  ;;  %vm778_vm7 = vweird.f32 %v751_v60 }
 0x35f   : > { %v754_v62 = vpop.xlane.xlu1 %753  ;;  %v766_v63 = vsel %vm765_vm4, %v1327_v53, %v762_v59 }
 0x360   : > { %1330 = vrcp.f32 %v754_v62  ;;  %v771_v0 = vsel %vm768_vm5, %v770_v61, %v766_v63  ;;  %v785_v15 = vor.u32 1.1754944e-38, %v784_v9  ;;  %vm783_vm9 = vcmp.eq.f32.partialorder %v782_v11, 8.507059e+37  ;;  %v1072_v9 = vld [vmem:[%s1621_s7 + $0x10] sm:$0xff]  ;;  %v1070_v11 = vld [vmem:[%s1621_s7] sm:$0xff] }
 0x361   : > { %v772_v1 = vmul.f32 %v1319_v35, %v771_v0  ;;  %v799_v19 = vand.u32 2147483648, %v754_v62  ;;  %vm793_vm11 = vweird.f32 %v754_v62  ;;  %v797_v21 = vand.u32 2147483647, %v754_v62 }
 0x363   : > { %1285 = vmatmul.msk.f32.vlgmr.msrb.gmra.mxu2 %vm629_vm1, %v772_v1  ;;  %v800_v26 = vor.u32 1.1754944e-38, %v799_v19  ;;  %vm798_vm13 = vcmp.eq.f32.partialorder %v797_v21, 8.507059e+37  ;;  %v1312_v21 = vld [vmem:[%s1619_s5] ss:$0 sm:$0xff] }
 0x364   : > { %v1329_v2 = vpop.eup %1328 }
 0x365   : > { %v774_v3 = vmul.f32 %v1329_v2, %v751_v60  ;;  %vm779_vm6 = vweird.f32 %v1329_v2  ;;  %v1350_v60 = vmov 32.0  }
 0x366   : > { %v1331_v5 = vpop.eup %1330  ;;  %vm780_vm8 = vmor %vm778_vm7, %vm779_vm6 }
 0x367   : > { %v775_v6 = vsub.f32 1.0, %v774_v3  ;;  %v789_v7 = vmul.f32 %v1331_v5, %v754_v62  ;;  %v757_v8 = vpop.xlane.xlu2 %756  ;;  %vm794_vm10 = vweird.f32 %v1331_v5 }
 0x368   : > { %1332 = vrcp.f32 %v757_v8  ;;  %vm795_vm12 = vmor %vm793_vm11, %vm794_vm10  ;;  %v814_v27 = vand.u32 2147483648, %v757_v8  ;;  %v812_v29 = vand.u32 2147483647, %v757_v8  ;;  %vm808_vm15 = vweird.f32 %v757_v8 }
 0x369   : > { %v776_v10 = vmul.f32 %v1329_v2, %v775_v6  ;;  %v790_v12 = vsub.f32 1.0, %v789_v7  ;;  %1334 = vrcp.f32 %v1350_v60 }
 0x36a   : > { %v815_v32 = vor.u32 1.1754944e-38, %v814_v27  ;;  %vm813_vm3 = vcmp.eq.f32.partialorder %v812_v29, 8.507059e+37  ;;  %v1160_v27 = vld [vmem:[%s1623_s9 + $0x78] sm:$0xff]  ;;  %v1158_v29 = vld [vmem:[%s1623_s9 + $0x68] sm:$0xff] }
 0x36b   : > { %v777_v13 = vadd.f32 %v1329_v2, %v776_v10  ;;  %v791_v14 = vmul.f32 %v1331_v5, %v790_v12  ;;  %v1071_v10 = vld [vmem:[%s1621_s7 + $0x8] sm:$0xff]  ;;  %1165 = vmatpush.msrb.mxu3 %v1160_v27 }
 0x36d   : > { %v792_v16 = vadd.f32 %v1331_v5, %v791_v14  ;;  %v781_v17 = vsel %vm780_vm8, %v1329_v2, %v777_v13 }
 0x36e   : > { %v1333_v18 = vpop.eup %1332  ;;  %v786_v20 = vsel %vm783_vm9, %v785_v15, %v781_v17 }
 0x36f   : > { %v804_v22 = vmul.f32 %v1333_v18, %v757_v8  ;;  %v787_v23 = vmul.f32 %v1321_v44, %v786_v20  ;;  %v796_v24 = vsel %vm795_vm12, %v1331_v5, %v792_v16  ;;  %vm809_vm14 = vweird.f32 %v1333_v18  ;;  %v1335_v61 = vpop.eup %1334  ;;  %v1073_v8 = vld [vmem:[%s1621_s7 + $0x18] sm:$0xff] }
 0x370   : > { %v801_v30 = vsel %vm798_vm13, %v800_v26, %v796_v24  ;;  %vm810_vm2 = vmor %vm808_vm15, %vm809_vm14  ;;  %v1035_v62 = vmul.f32 32.0, %v1335_v61  ;;  %1093 = vmatpush.msrb.mxu2 %v1073_v8  ;;  %v1313_v24 = vld [vmem:[%s1620_s6] ss:$0 sm:$0xff] }
 0x371   : > { %v805_v25 = vsub.f32 1.0, %v804_v22  ;;  %1287 = vmatmul.msk.f32.vlgmr.msrb.gmra.mxu0 %vm629_vm1, %v787_v23  ;;  %v802_v34 = vmul.f32 %v1470_v47, %v801_v30  ;;  %v1314_v30 = vld [vmem:[%s1622_s8] ss:$0 sm:$0xff] }
 0x372   : > { %990 = vmatpush.msrb.mxu0 %v924_v39  ;;  %v1036_v63 = vsub.f32 1.0, %v1035_v62  ;;  %1094 = vmatpush.msrb.mxu2 %v1072_v9  ;;  %v1153_v39 = vld [vmem:[%s1623_s9 + $0x40] sm:$0xff] }
 0x373   : > { %v806_v28 = vmul.f32 %v1333_v18, %v805_v25 }
 0x374   : > { %v1037_v0 = vmul.f32 %v1335_v61, %v1036_v63  ;;  %1095 = vmatpush.msrb.mxu2 %v1071_v10 }
 0x375   : > { %v807_v31 = vadd.f32 %v1333_v18, %v806_v28  ;;  %v1159_v28 = vld [vmem:[%s1623_s9 + $0x70] sm:$0xff] }
 0x376   : > { %v1038_v1 = vadd.f32 %v1335_v61, %v1037_v0  ;;  %1096 = vmatpush.msrb.mxu2 %v1070_v11  ;;  %1166 = vmatpush.msrb.mxu3 %v1159_v28 }
 0x377   : > { %v811_v33 = vsel %vm810_vm2, %v1333_v18, %v807_v31  ;;  %v1157_v31 = vld [vmem:[%s1623_s9 + $0x60] sm:$0xff] }
 0x378   : > { %v816_v35 = vsel %vm813_vm3, %v815_v32, %v811_v33  ;;  %1167 = vmatpush.msrb.mxu3 %v1158_v29  ;;  %v1156_v32 = vld [vmem:[%s1623_s9 + $0x58] sm:$0xff] }
 0x379   : > { %1289 = vmatmul.msk.f32.vlgmr.msra.gmra.mxu0 %vm629_vm1, %v802_v34  ;;  %v817_v36 = vmul.f32 %v1474_v50, %v816_v35  ;;  %v1155_v35 = vld [vmem:[%s1623_s9 + $0x50] sm:$0xff] }
 0x37a   : > { %1168 = vmatpush.msrb.mxu3 %v1157_v31 }
 0x37b   : > { %1291 = vmatmul.msk.f32.vlgmr.msrb.gmra.mxu1 %vm629_vm1, %v817_v36 }
 0x37c   : > { %1169 = vmatpush.msrb.mxu3 %v1156_v32 }
 0x37e   : > { %1170 = vmatpush.msrb.mxu3 %v1155_v35 }
 0x380   : > { %1171 = vmatpush.msrb.mxu3 %v1154_v37 }
 0x382   : > { %1172 = vmatpush.msrb.mxu3 %v1153_v39 }
 0x3e6   : > { %v841_v41 = vpop.f32.mrf.mxu2 }
 0x3e7   : > { %1292 = vmatmul.msk.f32.vlgmr.msra.gmra.mxu2 %vm629_vm1, %v841_v41  ;;  %v1152_v41 = vld [vmem:[%s1623_s9 + $0x38] sm:$0xff] }
 0x3e8   : > { %1173 = vmatpush.msrb.mxu3 %v1152_v41  ;;  %v1316_v41 = vld [vmem:[%s1625_s11] ss:$0 sm:$0xff] }
 0x3ee   : > { %v867_v42 = vpop.f32.mrf.mxu0 }
 0x3ef   : > { %1293 = vmatmul.msk.f32.vlgmr.msra.gmra.mxu3 %vm629_vm1, %v867_v42 }
 0x3f6   : > { %v893_v43 = vpop.f32.mrf.mxu0 }
 0x3f7   : > { %1294 = vmatmul.msk.f32.vlgmr.msrb.gmra.mxu0 %vm629_vm1, %v893_v43 }
 0x3f8   : > { %v919_v44 = vpop.f32.mrf.mxu1 }
 0x3f9   : > { %1295 = vmatmul.msk.f32.vlgmr.msra.gmra.mxu1 %vm629_vm1, %v919_v44  ;;  %vm1039_vm1 = vweird.f32 %v1335_v61  ;;  %v1151_v44 = vld [vmem:[%s1623_s9 + $0x30] sm:$0xff] }
 0x3fa   : > { %v1509_v2 = vsel %vm1039_vm1, %v1335_v61, %v1038_v1  ;;  %1174 = vmatpush.msrb.mxu3 %v1151_v44 }
 0x46a   : > { %v946_v45 = vpop.f32.mrf.mxu2 }
 0x46b   : > { %v1018_v47 = vsel %vm445_vm0, %v946_v45, 0.0 }
 0x472   : > { %v969_v46 = vpop.f32.mrf.mxu3 }
 0x473   : > { %v1019_v48 = vsel %vm445_vm0, %v969_v46, 0.0 }
 0x474   : > { %v1020_v49 = vadd.f32 %v1019_v48, %v1018_v47  ;;  %v992_v50 = vpop.f32.mrf.mxu0  ;;  %v1150_v47 = vld [vmem:[%s1623_s9 + $0x28] sm:$0xff] }
 0x475   : > { %v1021_v51 = vsel %vm445_vm0, %v992_v50, 0.0  ;;  %1175 = vmatpush.msrb.mxu3 %v1150_v47  ;;  %v1149_v50 = vld [vmem:[%s1623_s9 + $0x20] sm:$0xff] }
 0x476   : > { %v1022_v52 = vadd.f32 %v1021_v51, %v1020_v49  ;;  %v1015_v53 = vpop.f32.mrf.mxu1  ;;  %v1148_v51 = vld [vmem:[%s1623_s9 + $0x18] sm:$0xff] }
 0x477   : > { %v1023_v55 = vsel %vm445_vm0, %v1015_v53, 0.0  ;;  %1176 = vmatpush.msrb.mxu3 %v1149_v50  ;;  %v1147_v53 = vld [vmem:[%s1623_s9 + $0x10] sm:$0xff] }
 0x478   : > { %v1024_v56 = vadd.f32 %v1023_v55, %v1022_v52 }
 0x479   : > { %1177 = vmatpush.msrb.mxu3 %v1148_v51 }
 0x47a   : > { %v1029_v57 = vadd.f32 %v1311_v54, %v1024_v56  ;;  %v1146_v56 = vld [vmem:[%s1623_s9 + $0x8] sm:$0xff] }
 0x47b   : > { %1178 = vmatpush.msrb.mxu3 %v1147_v53 }
 0x47c   : > { %v1030_v58 = vadd.f32 %v1029_v57, %v1449_v4 }
 0x47d   : > { %1179 = vmatpush.msrb.mxu3 %v1146_v56 }
 0x47e   : > { %v1031_v59 = vsel %vm445_vm0, %v1030_v58, 0.0 }
 0x47f   : > { %1032 = vadd.xlane.f32.xlu1 %v1031_v59 }
 0x4f2   : > { %v1033_v3 = vpop.xlane.xlu1 %1032 }
 0x4f3   : > { %v1041_v5 = vmul.f32 %v1509_v2, %v1033_v3 }
 0x4f5   : > { %v1042_v6 = vsub.f32 %v1030_v58, %v1041_v5  ;;  %v1145_v58 = vld [vmem:[%s1623_s9] sm:$0xff] }
 0x4f6   : > { %1180 = vmatpush.msrb.mxu3 %v1145_v58 }
 0x4f7   : > { %v1043_v7 = vmul.f32 %v1042_v6, %v1042_v6 }
 0x4f9   : > { %v1044_v4 = vsel %vm445_vm0, %v1043_v7, 0.0 }
 0x4fa   : > { %1045 = vadd.xlane.f32.xlu2 %v1044_v4 }
 0x56d   : > { %v1046_v12 = vpop.xlane.xlu2 %1045 }
 0x56e   : > { %v1047_v13 = vmul.f32 %v1046_v12, %v1509_v2 }
 0x570   : > { %v1048_v14 = vadd.f32 1e-05, %v1047_v13 }
 0x572   : > { %1336 = vrsqrt.f32 %v1048_v14  ;;  %vm1055_vm5 = vweird.f32 %v1048_v14 }
 0x578   : > { %v1337_v15 = vpop.eup %1336 }
 0x579   : > { %v1050_v16 = vmul.f32 %v1337_v15, %v1048_v14  ;;  %vm1056_vm4 = vweird.f32 %v1337_v15 }
 0x57a   : > { %vm1057_vm6 = vmor %vm1055_vm5, %vm1056_vm4 }
 0x57b   : > { %v1051_v17 = vmul.f32 %v1337_v15, %v1050_v16 }
 0x57d   : > { %v1052_v18 = vmul.f32 0.5, %v1051_v17 }
 0x57f   : > { %v1053_v19 = vsub.f32 1.5, %v1052_v18 }
 0x581   : > { %v1054_v20 = vmul.f32 %v1337_v15, %v1053_v19 }
 0x583   : > { %v1058_v22 = vsel %vm1057_vm6, %v1337_v15, %v1054_v20 }
 0x584   : > { %v1059_v23 = vmul.f32 %v1058_v22, %v1042_v6  ;;  %v1315_v22 = vld [vmem:[%s1624_s10] ss:$0 sm:$0xff] }
 0x586   : > { %v1064_v25 = vmul.f32 %v1312_v21, %v1059_v23 }
 0x588   : > { %v1532_v26 = vadd.f32 %v1313_v24, %v1064_v25 }
 0x58a   : > { %1296 = vmatmul.msk.f32.vlgmr.msrb.gmra.mxu2 %vm445_vm0, %v1532_v26 }
 0x60d   : > { %v1098_v33 = vpop.f32.mrf.mxu2 }
 0x60e   : > { %v1554_v34 = vadd.f32 %v1314_v30, %v1098_v33 }
 0x610   : > { %v1102_v36 = vmul.f32 0.70710677, %v1554_v34  ;;  %v1101_v19 = vmul.f32 0.5, %v1554_v34 }
 0x612   : > { %v1103_v38 = vmul.f32 %v1102_v36, %v1102_v36 }
 0x614   : > { %v1104_v40 = vmin.f32 %v1103_v38, 16.0 }
 0x616   : > { %v1105_v42 = vmul.f32 2.1237322e-06, %v1104_v40  ;;  %v1116_v43 = vmul.f32 3.8918573e-05, %v1104_v40 }
 0x618   : > { %v1106_v45 = vadd.f32 0.00028619796, %v1105_v42  ;;  %v1117_v46 = vadd.f32 0.001143296, %v1116_v43 }
 0x61a   : > { %v1107_v48 = vmul.f32 %v1106_v45, %v1104_v40  ;;  %v1118_v49 = vmul.f32 %v1117_v46, %v1104_v40 }
 0x61c   : > { %v1119_v52 = vadd.f32 0.014752088, %v1118_v49  ;;  %v1108_v54 = vadd.f32 0.0036580483, %v1107_v48 }
 0x61e   : > { %v1120_v55 = vmul.f32 %v1119_v52, %v1104_v40  ;;  %v1109_v59 = vmul.f32 %v1108_v54, %v1104_v40 }
 0x620   : > { %v1121_v57 = vadd.f32 0.112945676, %v1120_v55  ;;  %v1110_v62 = vadd.f32 0.05243302, %v1109_v59 }
 0x622   : > { %v1122_v60 = vmul.f32 %v1121_v57, %v1104_v40  ;;  %v1111_v1 = vmul.f32 %v1110_v62, %v1104_v40 }
 0x624   : > { %v1123_v61 = vadd.f32 0.4994258, %v1122_v60  ;;  %v1112_v3 = vadd.f32 0.18741608, %v1111_v1 }
 0x626   : > { %v1124_v63 = vmul.f32 %v1123_v61, %v1104_v40  ;;  %v1113_v6 = vmul.f32 %v1112_v3, %v1104_v40 }
 0x628   : > { %v1125_v0 = vadd.f32 1.0, %v1124_v63  ;;  %v1114_v9 = vadd.f32 1.1283791, %v1113_v6 }
 0x62a   : > { %1338 = vrcp.f32 %v1125_v0  ;;  %v1137_v8 = vand.u32 2147483648, %v1125_v0  ;;  %v1135_v11 = vand.u32 2147483647, %v1125_v0  ;;  %vm1131_vm8 = vweird.f32 %v1125_v0 }
 0x62b   : > { %v1115_v14 = vmul.f32 %v1114_v9, %v1102_v36 }
 0x62c   : > { %v1138_v13 = vor.u32 1.1754944e-38, %v1137_v8  ;;  %vm1136_vm10 = vcmp.eq.f32.partialorder %v1135_v11, 8.507059e+37 }
 0x630   : > { %v1339_v5 = vpop.eup %1338 }
 0x631   : > { %v1127_v7 = vmul.f32 %v1339_v5, %v1125_v0  ;;  %vm1132_vm7 = vweird.f32 %v1339_v5 }
 0x632   : > { %vm1133_vm9 = vmor %vm1131_vm8, %vm1132_vm7 }
 0x633   : > { %v1128_v4 = vsub.f32 1.0, %v1127_v7 }
 0x635   : > { %v1129_v10 = vmul.f32 %v1339_v5, %v1128_v4 }
 0x637   : > { %v1130_v12 = vadd.f32 %v1339_v5, %v1129_v10 }
 0x639   : > { %v1134_v15 = vsel %vm1133_vm9, %v1339_v5, %v1130_v12 }
 0x63a   : > { %v1139_v16 = vsel %vm1136_vm10, %v1138_v13, %v1134_v15 }
 0x63b   : > { %v1140_v17 = vmul.f32 %v1139_v16, %v1115_v14 }
 0x63d   : > { %v1297_v18 = vclamps-f32 %v1140_v17, 1.0 }
 0x63f   : > { %v1143_v20 = vadd.f32 1.0, %v1297_v18 }
 0x641   : > { %v1144_v21 = vmul.f32 %v1143_v20, %v1101_v19 }
 0x643   : > { %1181 = vmatmul.f32.vlgmr.msrb.gmra.mxu3 %v1144_v21 }
 0x6c6   : > { %v1182_v23 = vpop.f32.mrf.mxu3 }
 0x6c7   : > { %v1183_v24 = vadd.f32 %v1315_v22, %v1182_v23 }
 0x6c9   : > { %v1185_v25 = vadd.f32 %v1183_v24, %v1532_v26 }
 0x6cb   : > { %v1186_v27 = vsel %vm445_vm0, %v1185_v25, 0.0 }
 0x6cc   : > { %1187 = vadd.xlane.f32.xlu1 %v1186_v27 }
 0x73f   : > { %v1188_v28 = vpop.xlane.xlu1 %1187 }
 0x740   : > { %v1189_v29 = vmul.f32 %v1188_v28, %v1509_v2 }
 0x742   : > { %v1190_v30 = vsub.f32 %v1185_v25, %v1189_v29 }
 0x744   : > { %v1191_v31 = vmul.f32 %v1190_v30, %v1190_v30 }
 0x746   : > { %v1192_v32 = vsel %vm445_vm0, %v1191_v31, 0.0 }
 0x747   : > { %1193 = vadd.xlane.f32.xlu2 %v1192_v32 }
 0x7ba   : > { %v1194_v33 = vpop.xlane.xlu2 %1193 }
 0x7bb   : > { %v1195_v34 = vmul.f32 %v1194_v33, %v1509_v2  ;;  %v1317_v2 = vld [vmem:[%s1626_s12] ss:$0 sm:$0xff] }
 0x7bd   : > { %v1196_v35 = vadd.f32 1e-05, %v1195_v34 }
 0x7bf   : > { %1340 = vrsqrt.f32 %v1196_v35  ;;  %vm1203_vm12 = vweird.f32 %v1196_v35 }
 0x7c5   : > { %v1341_v36 = vpop.eup %1340 }
 0x7c6   : > { %v1198_v37 = vmul.f32 %v1341_v36, %v1196_v35  ;;  %vm1204_vm11 = vweird.f32 %v1341_v36 }
 0x7c7   : > { %vm1205_vm13 = vmor %vm1203_vm12, %vm1204_vm11 }
 0x7c8   : > { %v1199_v26 = vmul.f32 %v1341_v36, %v1198_v37 }
 0x7ca   : > { %v1200_v38 = vmul.f32 0.5, %v1199_v26 }
 0x7cc   : > { %v1201_v39 = vsub.f32 1.5, %v1200_v38 }
 0x7ce   : > { %v1202_v40 = vmul.f32 %v1341_v36, %v1201_v39 }
 0x7d0   : > { %v1206_v42 = vsel %vm1205_vm13, %v1341_v36, %v1202_v40 }
 0x7d1   : > { %v1207_v43 = vmul.f32 %v1206_v42, %v1190_v30 }
 0x7d3   : > { %v1212_v44 = vmul.f32 %v1316_v41, %v1207_v43 }
 0x7d5   : > { %v1217_v45 = vadd.f32 %v1317_v2, %v1212_v44 }
 0x7d7   : > { %1218 = vst.msk [vmem:[%s435_s17] sm:$0xff] %vm445_vm0, %v1217_v45 }
 0x7d8 PF: > { %s23_s25 = sadd.s32 1, %s1348_s25  }
 0x7d9   : > { %p20_p4 = scmp.ge.s32.totalorder %s23_s25, 4  }
 0x7db   :  { %22 = sbr.rel (!%p20_p4) target bundleno = 1 (0x1), region = 102 }

</bundles_post_ra>
